<compile_context>
chip_gen: v7x
topology: tpu7x:2x2x1
jax: 0.10.0
libtpu: 0.0.40
codegen_flags: <defaults>
</compile_context>

<pallas_src>
import functools

import jax
import jax.numpy as jnp
from jax.experimental import pallas as pl
from jax.experimental.pallas import tpu as pltpu

LANE = 128  # TPU lane width; all layer widths are padded to this.


def _round_up(x, m):
    return ((x + m - 1) // m) * m


def _pad_to(a, shape):
    return jnp.pad(a, [(0, s - d) for d, s in zip(a.shape, shape)])


def dqn_kernel(x_ref, w_ref, b_ref, o_ref):
    # x_ref: (TB, 128)   -- one batch tile, feature dim zero-padded to 128
    # w_ref: (3, 128, 128) -- [W1; W2; W3], each zero-padded to (128, 128), x @ W layout
    # b_ref: (3, 1, 128)   -- [b1; b2; b3], zero-padded to 128 lanes
    # o_ref: (TB, 128)     -- lane-dense output tile (real logits live in [:, :action_size])
    x = x_ref[...]
    h1 = jnp.dot(x, w_ref[0], preferred_element_type=jnp.float32) + b_ref[0]
    h1 = jnp.maximum(h1, 0.0)
    h2 = jnp.dot(h1, w_ref[1], preferred_element_type=jnp.float32) + b_ref[1]
    h2 = jnp.maximum(h2, 0.0)
    o = jnp.dot(h2, w_ref[2], preferred_element_type=jnp.float32) + b_ref[2]
    o_ref[...] = o.astype(o_ref.dtype)


def pack_params(params):
    """Zero-pad every layer to 128 lanes and pack into one weight slab + one bias slab.

    Padding is semantics-preserving: padded weight rows/cols and padded biases are zero,
    so padded hidden units are ReLU(0)=0 and contribute nothing downstream.
    """
    w1, b1, w2, b2, w3, b3 = params
    assert w1.shape[0] <= LANE, "state_size > 128 not supported by the packed-slab layout"
    w_slab = jnp.stack([
        _pad_to(w1, (LANE, LANE)),
        _pad_to(w2, (LANE, LANE)),
        _pad_to(w3, (LANE, LANE)),
    ])  # (3, 128, 128)
    b_slab = jnp.stack([
        _pad_to(b1.reshape(1, -1), (1, LANE)),
        _pad_to(b2.reshape(1, -1), (1, LANE)),
        _pad_to(b3.reshape(1, -1), (1, LANE)),
    ])  # (3, 1, 128)
    return w_slab, b_slab


@functools.partial(jax.jit, static_argnames=("action_size", "block_batch"))
def dqn_forward(x, w_slab, b_slab, *, action_size, block_batch=128):
    batch, state_size = x.shape
    # Batch tile: up to 128 rows, at least a multiple of 8 (sublane granularity).
    tb = min(block_batch, _round_up(batch, 8))
    num_tiles = pl.cdiv(batch, tb)
    padded_batch = num_tiles * tb

    # Zero-pad batch rows and the feature dim to the lane width (padded rows are sliced off).
    x_p = jnp.pad(x, ((0, padded_batch - batch), (0, LANE - state_size)))

    out = pl.pallas_call(
        dqn_kernel,
        out_shape=jax.ShapeDtypeStruct((padded_batch, LANE), jnp.float32),
        grid=(num_tiles,),
        in_specs=[
            # Activations: tiled over the batch axis.
            pl.BlockSpec((tb, LANE), lambda i: (i, 0)),
            # Weights / biases: whole-array, grid-invariant -> stay VMEM-resident.
            pl.BlockSpec((3, LANE, LANE), lambda i: (0, 0, 0)),
            pl.BlockSpec((3, 1, LANE), lambda i: (0, 0, 0)),
        ],
        out_specs=pl.BlockSpec((tb, LANE), lambda i: (i, 0)),
        compiler_params=pltpu.CompilerParams(
            dimension_semantics=("parallel",),  # lets v7x split the batch across its 2 TCs
        ),
    )(x_p, w_slab, b_slab)

    return out[:batch, :action_size]


def init_params(key, state_size, action_size):
    # PyTorch nn.Linear default init: U(-1/sqrt(fan_in), 1/sqrt(fan_in)).
    # Weights stored as (in_features, out_features) so the kernel computes x @ W + b
    # (transposed vs. PyTorch's (out, in) convention).
    dims = [(state_size, 64), (64, 32), (32, action_size)]
    params = []
    for fan_in, fan_out in dims:
        kw, kb, key = jax.random.split(key, 3)
        bound = 1.0 / jnp.sqrt(float(fan_in))
        w = jax.random.uniform(kw, (fan_in, fan_out), jnp.float32, -bound, bound)
        b = jax.random.uniform(kb, (fan_out,), jnp.float32, -bound, bound)
        params += [w, b]
    return tuple(params)


def reference_forward(x, params):
    w1, b1, w2, b2, w3, b3 = params
    h1 = jnp.maximum(x @ w1 + b1, 0.0)
    h2 = jnp.maximum(h1 @ w2 + b2, 0.0)
    return h2 @ w3 + b3


if __name__ == "__main__":
    batch, state_size, action_size = 256, 16, 4  # typical DQN replay-batch sized input
    key = jax.random.PRNGKey(0)
    kx, kp = jax.random.split(key)
    x = jax.random.normal(kx, (batch, state_size), jnp.float32)
    params = init_params(kp, state_size, action_size)
    w_slab, b_slab = pack_params(params)

    out = dqn_forward(x, w_slab, b_slab, action_size=action_size)
    jax.block_until_ready(out)

    ref = reference_forward(x, params)
    assert out.shape == (batch, action_size)
    assert jnp.allclose(out, ref, atol=1e-5, rtol=1e-5), "mismatch vs. JAX reference"
    print("KERNEL_OK")
</pallas_src>

<mosaic_0001>
module attributes {stable_mosaic.version = 11 : i64} {
  func.func @dqn_kernel(%arg0: i32, %arg1: memref<128x128xf32, #tpu.memory_space<vmem>>, %arg2: memref<3x128x128xf32, #tpu.memory_space<vmem>>, %arg3: memref<3x1x128xf32, #tpu.memory_space<vmem>>, %arg4: memref<128x128xf32, #tpu.memory_space<vmem>>) attributes {dimension_semantics = [#tpu.dimension_semantics<parallel>], iteration_bounds = array<i64: 2>, scalar_prefetch = 0 : i64, scratch_operands = 0 : i64, tpu.core_type = #tpu.core_type<tc>, window_params = [{transform_indices = @transform_0, window_bounds = array<i64: 128, 128>}, {pipeline_mode = #tpu.pipeline_mode<synchronous>, transform_indices = @transform_1, window_bounds = array<i64: 3, 128, 128>}, {pipeline_mode = #tpu.pipeline_mode<synchronous>, transform_indices = @transform_2, window_bounds = array<i64: 3, 1, 128>}, {transform_indices = @transform_3, window_bounds = array<i64: 128, 128>}]} {
    %c0 = arith.constant 0 : index
    %c0_0 = arith.constant 0 : index
    %0 = vector.load %arg1[%c0, %c0_0] : memref<128x128xf32, #tpu.memory_space<vmem>>, vector<128x128xf32>
    %c0_1 = arith.constant 0 : index
    %c0_2 = arith.constant 0 : index
    %c0_3 = arith.constant 0 : index
    %1 = vector.load %arg2[%c0_1, %c0_2, %c0_3] : memref<3x128x128xf32, #tpu.memory_space<vmem>>, vector<1x128x128xf32>
    %2 = vector.shape_cast %1 : vector<1x128x128xf32> to vector<128x128xf32>
    %cst = arith.constant dense<0.000000e+00> : vector<128x128xf32>
    %3 = tpu.matmul %0, %2, %cst {dimension_numbers = #tpu.dot_dimension_numbers<[1], [0], [0], [1], [0, 0, 1, 1], [], []>} : vector<128x128xf32>, vector<128x128xf32>, vector<128x128xf32> -> vector<128x128xf32>
    %c0_4 = arith.constant 0 : index
    %c0_5 = arith.constant 0 : index
    %c0_6 = arith.constant 0 : index
    %4 = vector.load %arg3[%c0_4, %c0_5, %c0_6] : memref<3x1x128xf32, #tpu.memory_space<vmem>>, vector<1x1x128xf32>
    %5 = vector.shape_cast %4 : vector<1x1x128xf32> to vector<1x128xf32>
    %6 = vector.broadcast %5 : vector<1x128xf32> to vector<128x128xf32>
    %7 = arith.addf %3, %6 : vector<128x128xf32>
    %cst_7 = arith.constant 0.000000e+00 : f32
    %8 = vector.broadcast %cst_7 : f32 to vector<128x128xf32>
    %9 = arith.maximumf %7, %8 : vector<128x128xf32>
    %c1 = arith.constant 1 : index
    %c0_8 = arith.constant 0 : index
    %c0_9 = arith.constant 0 : index
    %10 = vector.load %arg2[%c1, %c0_8, %c0_9] : memref<3x128x128xf32, #tpu.memory_space<vmem>>, vector<1x128x128xf32>
    %11 = vector.shape_cast %10 : vector<1x128x128xf32> to vector<128x128xf32>
    %cst_10 = arith.constant dense<0.000000e+00> : vector<128x128xf32>
    %12 = tpu.matmul %9, %11, %cst_10 {dimension_numbers = #tpu.dot_dimension_numbers<[1], [0], [0], [1], [0, 0, 1, 1], [], []>} : vector<128x128xf32>, vector<128x128xf32>, vector<128x128xf32> -> vector<128x128xf32>
    %c1_11 = arith.constant 1 : index
    %c0_12 = arith.constant 0 : index
    %c0_13 = arith.constant 0 : index
    %13 = vector.load %arg3[%c1_11, %c0_12, %c0_13] : memref<3x1x128xf32, #tpu.memory_space<vmem>>, vector<1x1x128xf32>
    %14 = vector.shape_cast %13 : vector<1x1x128xf32> to vector<1x128xf32>
    %15 = vector.broadcast %14 : vector<1x128xf32> to vector<128x128xf32>
    %16 = arith.addf %12, %15 : vector<128x128xf32>
    %cst_14 = arith.constant 0.000000e+00 : f32
    %17 = vector.broadcast %cst_14 : f32 to vector<128x128xf32>
    %18 = arith.maximumf %16, %17 : vector<128x128xf32>
    %c2 = arith.constant 2 : index
    %c0_15 = arith.constant 0 : index
    %c0_16 = arith.constant 0 : index
    %19 = vector.load %arg2[%c2, %c0_15, %c0_16] : memref<3x128x128xf32, #tpu.memory_space<vmem>>, vector<1x128x128xf32>
    %20 = vector.shape_cast %19 : vector<1x128x128xf32> to vector<128x128xf32>
    %cst_17 = arith.constant dense<0.000000e+00> : vector<128x128xf32>
    %21 = tpu.matmul %18, %20, %cst_17 {dimension_numbers = #tpu.dot_dimension_numbers<[1], [0], [0], [1], [0, 0, 1, 1], [], []>} : vector<128x128xf32>, vector<128x128xf32>, vector<128x128xf32> -> vector<128x128xf32>
    %c2_18 = arith.constant 2 : index
    %c0_19 = arith.constant 0 : index
    %c0_20 = arith.constant 0 : index
    %22 = vector.load %arg3[%c2_18, %c0_19, %c0_20] : memref<3x1x128xf32, #tpu.memory_space<vmem>>, vector<1x1x128xf32>
    %23 = vector.shape_cast %22 : vector<1x1x128xf32> to vector<1x128xf32>
    %24 = vector.broadcast %23 : vector<1x128xf32> to vector<128x128xf32>
    %25 = arith.addf %21, %24 : vector<128x128xf32>
    %c0_21 = arith.constant 0 : index
    %c0_22 = arith.constant 0 : index
    %26 = vector.load %arg4[%c0_21, %c0_22] : memref<128x128xf32, #tpu.memory_space<vmem>>, vector<128x128xf32>
    tpu.vector_store %arg4[%c0_21, %c0_22], %25 {strides = array<i32>} : memref<128x128xf32, #tpu.memory_space<vmem>>, vector<128x128xf32>,
    return
  }
  func.func @transform_0(%arg0: i32) -> (i32, i32) {
    %c0_i32 = arith.constant 0 : i32
    %c0_i32_0 = arith.constant 0 : i32
    return %arg0, %c0_i32 : i32, i32
  }
  func.func @transform_1(%arg0: i32) -> (i32, i32, i32) {
    %c0_i32 = arith.constant 0 : i32
    %c0_i32_0 = arith.constant 0 : i32
    %c0_i32_1 = arith.constant 0 : i32
    %c0_i32_2 = arith.constant 0 : i32
    return %c0_i32, %c0_i32_0, %c0_i32_1 : i32, i32, i32
  }
  func.func @transform_2(%arg0: i32) -> (i32, i32, i32) {
    %c0_i32 = arith.constant 0 : i32
    %c0_i32_0 = arith.constant 0 : i32
    %c0_i32_1 = arith.constant 0 : i32
    %c0_i32_2 = arith.constant 0 : i32
    return %c0_i32, %c0_i32_0, %c0_i32_1 : i32, i32, i32
  }
  func.func @transform_3(%arg0: i32) -> (i32, i32) {
    %c0_i32 = arith.constant 0 : i32
    %c0_i32_0 = arith.constant 0 : i32
    return %arg0, %c0_i32 : i32, i32
  }
}

</mosaic_0001>

<bundles_post_ra>
// kernel: dqn_forward.1
= control target key start
LH: loop header
LB: loop body
LE: loop exit
PB: predicated region body
PF: predicated region fallthrough
CT: control target
= control target key end

     0   :  { %s1262_s12 = smov 0   ;;  %s1517_s0 = inlined_call_operand.vmem [shape: f32[256,128], index: 0, kind: input, shape index: {}]   ;;  %s1518_s1 = inlined_call_operand.vmem [shape: f32[3,128,128], index: 1, kind: input, shape index: {}]   ;;  %s1519_s2 = inlined_call_operand.vmem [shape: f32[3,1,128], index: 2, kind: input, shape index: {}]   ;;  %s1520_s3 = inlined_call_operand.vmem [shape: f32[256,128], index: 3, kind: output, shape index: {}]  }
   0x1 LB: > { %s802_s13 = sadd.s32 4294967295, %s1240_s12   ;;  %p806_p0 = scmp.ge.s32.totalorder %s1240_s12, 1  ;;  %s1240_s12 = sphi %s1262_s12, %s13_s12  }
   0x2   : > { %p138_p1 = scmp.lt.s32.totalorder %s1240_s12, 3 }
   0x4   : > { %p139_p2 = pnand %p806_p0, %p138_p1 }
   0x5   : > { %v190_v0 = vld [vmem:[%s1518_s1] sm:$0xff] (!%p139_p2)  ;;  %v191_v1 = vld [vmem:[%s1518_s1 + $0x8] sm:$0xff] (!%p139_p2)  ;;  %v192_v2 = vld [vmem:[%s1518_s1 + $0x10] sm:$0xff] (!%p139_p2)  ;;  %s807_s20 = sshll.u32 (!%p139_p2), %s802_s13, 4 }
   0x6   : > { %142 = sbr.rel (%p139_p2) target bundleno = 720 (0x2d0), region = 32  ;;  %v1114_v3 = vpack.c.bf16 (!%p139_p2), %v191_v1, %v190_v0  ;;  %v193_v4 = vld [vmem:[%s1518_s1 + $0x18] sm:$0xff] (!%p139_p2)  ;;  %p163_p3 = scmp.lt.s32.totalorder (!%p139_p2), %s807_s20, 31  ;;  %v194_v6 = vld [vmem:[%s1518_s1 + $0x20] sm:$0xff] (!%p139_p2)  ;;  %v195_v7 = vld [vmem:[%s1518_s1 + $0x28] sm:$0xff] (!%p139_p2) }
   0x7   : > { %v1118_v5 = vpack.c.bf16 (!%p139_p2), %v193_v4, %v192_v2  ;;  %v1122_v8 = vpack.c.bf16 (!%p139_p2), %v195_v7, %v194_v6  ;;  %v196_v9 = vld [vmem:[%s1518_s1 + $0x30] sm:$0xff] (!%p139_p2)  ;;  %v812_v10 = vld [vmem:[%s1518_s1 + $0x80] sm:$0xff] (!%p139_p2)  ;;  %v813_v11 = vld [vmem:[%s1518_s1 + $0x88] sm:$0xff] (!%p139_p2) }
   0x8   : > { %1115 = vmatprep.subr.bf16.mxu0 (!%p139_p2), %v1114_v3  ;;  %v197_v12 = vld [vmem:[%s1518_s1 + $0x38] sm:$0xff] (!%p139_p2)  ;;  %v1146_v13 = vpack.c.bf16 (!%p139_p2), %v813_v11, %v812_v10  ;;  %v814_v14 = vld [vmem:[%s1518_s1 + $0x90] sm:$0xff] (!%p139_p2)  ;;  %v198_v19 = vld [vmem:[%s1518_s1 + $0x40] sm:$0xff] (!%p139_p2) }
   0x9   : > { %1117 = vmatpush3.bf16.msra.mxu0 (!%p139_p2), %v1114_v3  ;;  %v815_v15 = vld [vmem:[%s1518_s1 + $0x98] sm:$0xff] (!%p139_p2)  ;;  %v1126_v18 = vpack.c.bf16 (!%p139_p2), %v197_v12, %v196_v9  ;;  %v199_v20 = vld [vmem:[%s1518_s1 + $0x48] sm:$0xff] (!%p139_p2)  ;;  %v816_v21 = vld [vmem:[%s1518_s1 + $0xa0] sm:$0xff] (!%p139_p2) }
   0xa   : > { %1119 = vmatprep.subr.bf16.mxu0 (!%p139_p2), %v1118_v5  ;;  %v1150_v17 = vpack.c.bf16 (!%p139_p2), %v815_v15, %v814_v14  ;;  %1147 = vmatprep.subr.bf16.mxu1 (!%p139_p2), %v1146_v13  ;;  %v817_v22 = vld [vmem:[%s1518_s1 + $0xa8] sm:$0xff] (!%p139_p2)  ;;  %v818_v23 = vld [vmem:[%s1518_s1 + $0xb0] sm:$0xff] (!%p139_p2)  ;;  %v1130_v24 = vpack.c.bf16 (!%p139_p2), %v199_v20, %v198_v19  ;;  %v819_v26 = vld [vmem:[%s1518_s1 + $0xb8] sm:$0xff] (!%p139_p2) }
   0xb   : > { %1149 = vmatpush3.bf16.msra.mxu1 (!%p139_p2), %v1146_v13  ;;  %v1154_v25 = vpack.c.bf16 (!%p139_p2), %v817_v22, %v816_v21  ;;  %v200_v27 = vld [vmem:[%s1518_s1 + $0x50] sm:$0xff] (!%p139_p2)  ;;  %v201_v28 = vld [vmem:[%s1518_s1 + $0x58] sm:$0xff] (!%p139_p2)  ;;  %v1158_v29 = vpack.c.bf16 (!%p139_p2), %v819_v26, %v818_v23  ;;  %v820_v30 = vld [vmem:[%s1518_s1 + $0xc0] sm:$0xff] (!%p139_p2) }
   0xc   : > { %1151 = vmatprep.subr.bf16.mxu1 (!%p139_p2), %v1150_v17  ;;  %v821_v31 = vld [vmem:[%s1518_s1 + $0xc8] sm:$0xff] (!%p139_p2)  ;;  %v1134_v32 = vpack.c.bf16 (!%p139_p2), %v201_v28, %v200_v27  ;;  %v202_v33 = vld [vmem:[%s1518_s1 + $0x60] sm:$0xff] (!%p139_p2)  ;;  %v822_v36 = vld [vmem:[%s1518_s1 + $0xd0] sm:$0xff] (!%p139_p2) }
   0xd   : > { %s1522_s20 = smov (!%p163_p3, %s807_s20), 31  ;;  %1121 = vmatpush3.bf16.msra.mxu0 %v1118_v5  ;;  %v203_v34 = vld [vmem:[%s1518_s1 + $0x68] sm:$0xff]  ;;  %v1162_v35 = vpack.c.bf16 %v821_v31, %v820_v30  ;;  %v823_v37 = vld [vmem:[%s1518_s1 + $0xd8] sm:$0xff]  ;;  %v204_v39 = vld [vmem:[%s1518_s1 + $0x70] sm:$0xff] }
   0xe   : > { %s808_s29 = sshll.u32 %s1522_s20, 3  ;;  %1123 = vmatprep.subr.bf16.mxu0 %v1122_v8  ;;  %v1138_v38 = vpack.c.bf16 %v203_v34, %v202_v33  ;;  %v205_v40 = vld [vmem:[%s1518_s1 + $0x78] sm:$0xff]  ;;  %v1166_v41 = vpack.c.bf16 %v823_v37, %v822_v36  ;;  %v824_v42 = vld [vmem:[%s1518_s1 + $0xe0] sm:$0xff]  ;;  %v825_v43 = vld [vmem:[%s1518_s1 + $0xe8] sm:$0xff] }
   0xf   : > { %s1308_s11 = scalar_lea.vmem %s1517_s0, %s808_s29  ;;  %1153 = vmatpush3.bf16.msra.mxu1 %v1150_v17  ;;  %v1142_v44 = vpack.c.bf16 %v205_v40, %v204_v39  ;;  %v1170_v45 = vpack.c.bf16 %v825_v43, %v824_v42  ;;  %v826_v61 = vld [vmem:[%s1518_s1 + $0xf0] sm:$0xff]  ;;  %v827_v62 = vld [vmem:[%s1518_s1 + $0xf8] sm:$0xff]  ;;  %v830_v0 = vld [vmem:[%s1518_s1 + $0x100] sm:$0xff]  ;;  %s1496_s27 = scalar_lea.vmem %s1520_s3, %s808_s29 }
  0x10   : > { %v174_v16 = vld [vmem:[%s1308_s11] sm:$0xff]  ;;  %1155 = vmatprep.subr.bf16.mxu1 %v1154_v25  ;;  %v175_v46 = vld [vmem:[%s1308_s11 + $0x8] sm:$0xff]  ;;  %v176_v47 = vld [vmem:[%s1308_s11 + $0x10] sm:$0xff]  ;;  %v1174_v63 = vpack.c.bf16 %v827_v62, %v826_v61 }
  0x11   : > { %978 = vmatprep.mubr.f32.mxu0 %v174_v16  ;;  %1125 = vmatpush3.bf16.msra.mxu0 %v1122_v8  ;;  %v177_v48 = vld [vmem:[%s1308_s11 + $0x18] sm:$0xff]  ;;  %v178_v49 = vld [vmem:[%s1308_s11 + $0x20] sm:$0xff]  ;;  %v179_v50 = vld [vmem:[%s1308_s11 + $0x28] sm:$0xff] }
  0x12   : > { %1127 = vmatprep.subr.bf16.mxu0 %v1126_v18  ;;  %v180_v51 = vld [vmem:[%s1308_s11 + $0x30] sm:$0xff]  ;;  %v181_v52 = vld [vmem:[%s1308_s11 + $0x38] sm:$0xff]  ;;  %v182_v53 = vld [vmem:[%s1308_s11 + $0x40] sm:$0xff] }
  0x13   : > { %1157 = vmatpush3.bf16.msra.mxu1 %v1154_v25  ;;  %v183_v54 = vld [vmem:[%s1308_s11 + $0x48] sm:$0xff]  ;;  %v184_v55 = vld [vmem:[%s1308_s11 + $0x50] sm:$0xff]  ;;  %v185_v56 = vld [vmem:[%s1308_s11 + $0x58] sm:$0xff] }
  0x14   : > { %1159 = vmatprep.subr.bf16.mxu1 %v1158_v29  ;;  %v186_v57 = vld [vmem:[%s1308_s11 + $0x60] sm:$0xff]  ;;  %v187_v58 = vld [vmem:[%s1308_s11 + $0x68] sm:$0xff]  ;;  %v188_v59 = vld [vmem:[%s1308_s11 + $0x70] sm:$0xff] }
  0x15   : > { %1129 = vmatpush3.bf16.msra.mxu0 %v1126_v18  ;;  %v189_v60 = vld [vmem:[%s1308_s11 + $0x78] sm:$0xff]  ;;  %v831_v1 = vld [vmem:[%s1518_s1 + $0x108] sm:$0xff]  ;;  %v832_v2 = vld [vmem:[%s1518_s1 + $0x110] sm:$0xff] }
  0x16   : > { %1131 = vmatprep.subr.bf16.mxu0 %v1130_v24  ;;  %v1178_v3 = vpack.c.bf16 %v831_v1, %v830_v0  ;;  %v833_v4 = vld [vmem:[%s1518_s1 + $0x118] sm:$0xff]  ;;  %v834_v6 = vld [vmem:[%s1518_s1 + $0x120] sm:$0xff]  ;;  %v835_v7 = vld [vmem:[%s1518_s1 + $0x128] sm:$0xff] }
  0x17   : > { %1161 = vmatpush3.bf16.msra.mxu1 %v1158_v29  ;;  %v1182_v5 = vpack.c.bf16 %v833_v4, %v832_v2  ;;  %v1186_v8 = vpack.c.bf16 %v835_v7, %v834_v6  ;;  %v836_v9 = vld [vmem:[%s1518_s1 + $0x130] sm:$0xff]  ;;  %v837_v10 = vld [vmem:[%s1518_s1 + $0x138] sm:$0xff]  ;;  %v838_v12 = vld [vmem:[%s1518_s1 + $0x140] sm:$0xff] }
  0x18   : > { %1163 = vmatprep.subr.bf16.mxu1 %v1162_v35  ;;  %v1416_v11 = vpack.c.bf16 %v837_v10, %v836_v9  ;;  %v839_v13 = vld [vmem:[%s1518_s1 + $0x148] sm:$0xff]  ;;  %v840_v15 = vld [vmem:[%s1518_s1 + $0x150] sm:$0xff]  ;;  %v841_v16 = vld [vmem:[%s1518_s1 + $0x158] sm:$0xff] }
  0x19   : > { %1133 = vmatpush3.bf16.msra.mxu0 %v1130_v24  ;;  %v1425_v14 = vpack.c.bf16 %v839_v13, %v838_v12  ;;  %v1435_v17 = vpack.c.bf16 %v841_v16, %v840_v15  ;;  %v842_v18 = vld [vmem:[%s1518_s1 + $0x160] sm:$0xff]  ;;  %v843_v19 = vld [vmem:[%s1518_s1 + $0x168] sm:$0xff]  ;;  %v844_v6 = vld [vmem:[%s1518_s1 + $0x170] sm:$0xff] }
  0x1a   : > { %1135 = vmatprep.subr.bf16.mxu0 %v1134_v32  ;;  %v1445_v20 = vpack.c.bf16 %v843_v19, %v842_v18  ;;  %v1453_v21 = vld [vmem:[%s1519_s2] ss:$0 sm:$0xff]  ;;  %v845_v7 = vld [vmem:[%s1518_s1 + $0x178] sm:$0xff]  ;;  %v829_v9 = vld [vmem:[%s1519_s2 + $0x1] ss:$0 sm:$0xff] }
  0x1b   : > { %1165 = vmatpush3.bf16.msra.mxu1 %v1162_v35 }
  0x1c   : > { %1167 = vmatprep.subr.bf16.mxu1 %v1166_v41 }
  0x1d   : > { %1137 = vmatpush3.bf16.msra.mxu0 %v1134_v32 }
  0x1e   : > { %1139 = vmatprep.subr.bf16.mxu0 %v1138_v38 }
  0x1f   : > { %1169 = vmatpush3.bf16.msra.mxu1 %v1166_v41 }
  0x20   : > { %1171 = vmatprep.subr.bf16.mxu1 %v1170_v45 }
  0x21   : > { %1141 = vmatpush3.bf16.msra.mxu0 %v1138_v38 }
  0x22   : > { %1143 = vmatprep.subr.bf16.mxu0 %v1142_v44 }
  0x23   : > { %1173 = vmatpush3.bf16.msra.mxu1 %v1170_v45 }
  0x24   : > { %1175 = vmatprep.subr.bf16.mxu1 %v1174_v63 }
  0x25   : > { %1145 = vmatpush3.bf16.msra.mxu0 %v1142_v44 }
  0x26   : > { %1179 = vmatprep.subr.bf16.mxu0 %v1178_v3 }
  0x27   : > { %1177 = vmatpush3.bf16.msra.mxu1 %v1174_v63 }
  0x28   : > { %979 = vmatmul.mubr.f32.vlgmr.msra.gmra.mrb[0].mxu0 %v175_v46  ;;  %1210 = vmatprep.subr.bf16.mxu1 %v1178_v3 }
  0x29   : > { %981 = vmatprep.mubr.f32.mxu0 %v176_v47  ;;  %1181 = vmatpush3.bf16.msra.mxu0 %v1178_v3 }
  0x2a   : > { %1183 = vmatprep.subr.bf16.mxu0 %v1182_v5 }
  0x2c   : > { %982 = vmatmul.mubr.f32.gmra.mrb[2].mxu0 %v177_v48 }
  0x2d   : > { %984 = vmatprep.mubr.f32.mxu0 %v178_v49  ;;  %1185 = vmatpush3.bf16.msra.mxu0 %v1182_v5 }
  0x2e   : > { %1187 = vmatprep.subr.bf16.mxu0 %v1186_v8 }
  0x30   : > { %985 = vmatmul.mubr.f32.gmra.mrb[4].mxu0 %v179_v50 }
  0x31   : > { %987 = vmatprep.mubr.f32.mxu0 %v180_v51  ;;  %1189 = vmatpush3.bf16.msra.mxu0 %v1186_v8 }
  0x32   : > { %1191 = vmatprep.subr.bf16.mxu0 %v1416_v11 }
  0x34   : > { %988 = vmatmul.mubr.f32.gmra.mrb[6].mxu0 %v181_v52 }
  0x35   : > { %990 = vmatprep.mubr.f32.mxu0 %v182_v53  ;;  %1193 = vmatpush3.bf16.msra.mxu0 %v1416_v11 }
  0x36   : > { %1195 = vmatprep.subr.bf16.mxu0 %v1425_v14 }
  0x38   : > { %991 = vmatmul.mubr.f32.gmra.mrb[8].mxu0 %v183_v54 }
  0x39   : > { %993 = vmatprep.mubr.f32.mxu0 %v184_v55  ;;  %1197 = vmatpush3.bf16.msra.mxu0 %v1425_v14 }
  0x3a   : > { %1199 = vmatprep.subr.bf16.mxu0 %v1435_v17 }
  0x3c   : > { %994 = vmatmul.mubr.f32.gmra.mrb[10].mxu0 %v185_v56 }
  0x3d   : > { %996 = vmatprep.mubr.f32.mxu0 %v186_v57  ;;  %1201 = vmatpush3.bf16.msra.mxu0 %v1435_v17 }
  0x3e   : > { %1203 = vmatprep.subr.bf16.mxu0 %v1445_v20 }
  0x40   : > { %997 = vmatmul.mubr.f32.gmra.mrb[12].mxu0 %v187_v58 }
  0x41   : > { %999 = vmatprep.mubr.f32.mxu0 %v188_v59  ;;  %1205 = vmatpush3.bf16.msra.mxu0 %v1445_v20 }
  0x44   : > { %1000 = vmatmul.mubr.f32.gmra.mrb[14].mxu0 %v189_v60 }
  0xfb   : > { %v980_v22 = vpop.f32.mrb[0].mxu0 }
  0xfc   : > { %v285_v23 = vadd.f32 %v980_v22, %v1453_v21  ;;  %v279_v24 = vpop.f32.mrb[1].mxu0 }
  0xfd   : > { %v280_v25 = vadd.f32 %v1453_v21, %v279_v24 }
  0xfe   : > { %v359_v28 = vmax.f32 %v285_v23, 0.0 }
  0xff   : > { %v983_v26 = vpop.f32.mrb[2].mxu0  ;;  %v358_v27 = vmax.f32 %v280_v25, 0.0 }
 0x100   : > { %v295_v29 = vadd.f32 %v983_v26, %v1453_v21  ;;  %v289_v30 = vpop.f32.mrb[3].mxu0 }
 0x101   : > { %v290_v31 = vadd.f32 %v1453_v21, %v289_v30  ;;  %1034 = vmatprep.mubr.f32.mxu1 %v358_v27 }
 0x102   : > { %1035 = vmatmul.mubr.f32.vlgmr.msra.gmra.mrb[0].mxu1 %v359_v28  ;;  %v361_v34 = vmax.f32 %v295_v29, 0.0 }
 0x103   : > { %v360_v32 = vmax.f32 %v290_v31, 0.0  ;;  %v986_v33 = vpop.f32.mrb[4].mxu0  ;;  %1218 = vmatpush3.bf16.msra.mxu1 %v1178_v3 }
 0x104   : > { %v305_v35 = vadd.f32 %v986_v33, %v1453_v21  ;;  %v299_v36 = vpop.f32.mrb[5].mxu0  ;;  %1211 = vmatprep.subr.bf16.mxu1 %v1182_v5 }
 0x105   : > { %v300_v37 = vadd.f32 %v1453_v21, %v299_v36  ;;  %1037 = vmatprep.mubr.f32.mxu1 %v360_v32 }
 0x106   : > { %1038 = vmatmul.mubr.f32.gmra.mrb[2].mxu1 %v361_v34  ;;  %v363_v40 = vmax.f32 %v305_v35, 0.0 }
 0x107   : > { %v362_v38 = vmax.f32 %v300_v37, 0.0  ;;  %v989_v39 = vpop.f32.mrb[6].mxu0  ;;  %1219 = vmatpush3.bf16.msra.mxu1 %v1182_v5 }
 0x108   : > { %v315_v41 = vadd.f32 %v989_v39, %v1453_v21  ;;  %v309_v42 = vpop.f32.mrb[7].mxu0  ;;  %1212 = vmatprep.subr.bf16.mxu1 %v1186_v8 }
 0x109   : > { %v310_v43 = vadd.f32 %v1453_v21, %v309_v42  ;;  %1040 = vmatprep.mubr.f32.mxu1 %v362_v38 }
 0x10a   : > { %1041 = vmatmul.mubr.f32.gmra.mrb[4].mxu1 %v363_v40  ;;  %v365_v46 = vmax.f32 %v315_v41, 0.0 }
 0x10b   : > { %v364_v44 = vmax.f32 %v310_v43, 0.0  ;;  %v992_v45 = vpop.f32.mrb[8].mxu0  ;;  %1220 = vmatpush3.bf16.msra.mxu1 %v1186_v8  ;;  %v1206_v8 = vpack.c.bf16 %v845_v7, %v844_v6 }
 0x10c   : > { %v325_v47 = vadd.f32 %v992_v45, %v1453_v21  ;;  %v319_v48 = vpop.f32.mrb[9].mxu0  ;;  %1213 = vmatprep.subr.bf16.mxu1 %v1416_v11 }
 0x10d   : > { %v320_v49 = vadd.f32 %v1453_v21, %v319_v48  ;;  %1043 = vmatprep.mubr.f32.mxu1 %v364_v44  ;;  %1207 = vmatprep.subr.bf16.mxu0 %v1206_v8 }
 0x10e   : > { %1044 = vmatmul.mubr.f32.gmra.mrb[6].mxu1 %v365_v46  ;;  %v367_v52 = vmax.f32 %v325_v47, 0.0  ;;  %1209 = vmatpush3.bf16.msra.mxu0 %v1206_v8 }
 0x10f   : > { %v366_v50 = vmax.f32 %v320_v49, 0.0  ;;  %v995_v51 = vpop.f32.mrb[10].mxu0  ;;  %1221 = vmatpush3.bf16.msra.mxu1 %v1416_v11 }
 0x110   : > { %v335_v53 = vadd.f32 %v995_v51, %v1453_v21  ;;  %v329_v54 = vpop.f32.mrb[11].mxu0  ;;  %1214 = vmatprep.subr.bf16.mxu1 %v1425_v14 }
 0x111   : > { %v330_v55 = vadd.f32 %v1453_v21, %v329_v54  ;;  %1046 = vmatprep.mubr.f32.mxu1 %v366_v50 }
 0x112   : > { %1047 = vmatmul.mubr.f32.gmra.mrb[8].mxu1 %v367_v52  ;;  %v369_v58 = vmax.f32 %v335_v53, 0.0 }
 0x113   : > { %v368_v56 = vmax.f32 %v330_v55, 0.0  ;;  %v998_v57 = vpop.f32.mrb[12].mxu0  ;;  %1222 = vmatpush3.bf16.msra.mxu1 %v1425_v14 }
 0x114   : > { %v345_v59 = vadd.f32 %v998_v57, %v1453_v21  ;;  %v339_v60 = vpop.f32.mrb[13].mxu0  ;;  %1215 = vmatprep.subr.bf16.mxu1 %v1435_v17 }
 0x115   : > { %v340_v61 = vadd.f32 %v1453_v21, %v339_v60  ;;  %1049 = vmatprep.mubr.f32.mxu1 %v368_v56 }
 0x116   : > { %1050 = vmatmul.mubr.f32.gmra.mrb[10].mxu1 %v369_v58  ;;  %v371_v0 = vmax.f32 %v345_v59, 0.0  ;;  %v847_v58 = vld [vmem:[%s1519_s2 + $0x2] ss:$0 sm:$0xff] }
 0x117   : > { %v370_v62 = vmax.f32 %v340_v61, 0.0  ;;  %v1001_v63 = vpop.f32.mrb[14].mxu0  ;;  %1223 = vmatpush3.bf16.msra.mxu1 %v1435_v17 }
 0x118   : > { %v355_v1 = vadd.f32 %v1001_v63, %v1453_v21  ;;  %v349_v2 = vpop.f32.mrb[15].mxu0  ;;  %1216 = vmatprep.subr.bf16.mxu1 %v1445_v20 }
 0x119   : > { %v350_v3 = vadd.f32 %v1453_v21, %v349_v2  ;;  %1052 = vmatprep.mubr.f32.mxu1 %v370_v62 }
 0x11a   : > { %1053 = vmatmul.mubr.f32.gmra.mrb[12].mxu1 %v371_v0  ;;  %v373_v5 = vmax.f32 %v355_v1, 0.0 }
 0x11b   : > { %v372_v4 = vmax.f32 %v350_v3, 0.0  ;;  %1224 = vmatpush3.bf16.msra.mxu1 %v1445_v20 }
 0x11c   : > { %1217 = vmatprep.subr.bf16.mxu1 %v1206_v8 }
 0x11d   : > { %1055 = vmatprep.mubr.f32.mxu1 %v372_v4 }
 0x11e   : > { %1056 = vmatmul.mubr.f32.gmra.mrb[14].mxu1 %v373_v5 }
 0x11f   : > { %1225 = vmatpush3.bf16.msra.mxu1 %v1206_v8 }
 0x1d5   : > { %v1036_v10 = vpop.f32.mrb[0].mxu1 }
 0x1d6   : > { %v471_v11 = vadd.f32 %v1036_v10, %v829_v9  ;;  %v465_v12 = vpop.f32.mrb[1].mxu1 }
 0x1d7   : > { %v466_v13 = vadd.f32 %v829_v9, %v465_v12 }
 0x1d8   : > { %v545_v16 = vmax.f32 %v471_v11, 0.0 }
 0x1d9   : > { %v544_v14 = vmax.f32 %v466_v13, 0.0  ;;  %v1039_v15 = vpop.f32.mrb[2].mxu1 }
 0x1da   : > { %v481_v17 = vadd.f32 %v1039_v15, %v829_v9  ;;  %v475_v18 = vpop.f32.mrb[3].mxu1 }
 0x1db   : > { %v476_v19 = vadd.f32 %v829_v9, %v475_v18  ;;  %1090 = vmatprep.mubr.f32.mxu0 %v544_v14 }
 0x1dc   : > { %1091 = vmatmul.mubr.f32.vlgmr.msra.gmra.mrb[16].mxu0 %v545_v16  ;;  %v547_v22 = vmax.f32 %v481_v17, 0.0 }
 0x1dd   : > { %v546_v20 = vmax.f32 %v476_v19, 0.0  ;;  %v1042_v21 = vpop.f32.mrb[4].mxu1 }
 0x1de   : > { %v491_v23 = vadd.f32 %v1042_v21, %v829_v9  ;;  %v485_v24 = vpop.f32.mrb[5].mxu1 }
 0x1df   : > { %v486_v25 = vadd.f32 %v829_v9, %v485_v24  ;;  %1093 = vmatprep.mubr.f32.mxu0 %v546_v20 }
 0x1e0   : > { %1094 = vmatmul.mubr.f32.gmra.mrb[18].mxu0 %v547_v22  ;;  %v549_v28 = vmax.f32 %v491_v23, 0.0 }
 0x1e1   : > { %v548_v26 = vmax.f32 %v486_v25, 0.0  ;;  %v1045_v27 = vpop.f32.mrb[6].mxu1 }
 0x1e2   : > { %v501_v29 = vadd.f32 %v1045_v27, %v829_v9  ;;  %v495_v30 = vpop.f32.mrb[7].mxu1 }
 0x1e3   : > { %v496_v31 = vadd.f32 %v829_v9, %v495_v30  ;;  %1096 = vmatprep.mubr.f32.mxu0 %v548_v26 }
 0x1e4   : > { %1097 = vmatmul.mubr.f32.gmra.mrb[20].mxu0 %v549_v28  ;;  %v551_v34 = vmax.f32 %v501_v29, 0.0 }
 0x1e5   : > { %v550_v32 = vmax.f32 %v496_v31, 0.0  ;;  %v1048_v33 = vpop.f32.mrb[8].mxu1 }
 0x1e6   : > { %v511_v35 = vadd.f32 %v1048_v33, %v829_v9  ;;  %v505_v36 = vpop.f32.mrb[9].mxu1 }
 0x1e7   : > { %v506_v37 = vadd.f32 %v829_v9, %v505_v36  ;;  %1099 = vmatprep.mubr.f32.mxu0 %v550_v32 }
 0x1e8   : > { %1100 = vmatmul.mubr.f32.gmra.mrb[22].mxu0 %v551_v34  ;;  %v553_v40 = vmax.f32 %v511_v35, 0.0 }
 0x1e9   : > { %v552_v38 = vmax.f32 %v506_v37, 0.0  ;;  %v1051_v39 = vpop.f32.mrb[10].mxu1 }
 0x1ea   : > { %v521_v41 = vadd.f32 %v1051_v39, %v829_v9  ;;  %v515_v42 = vpop.f32.mrb[11].mxu1 }
 0x1eb   : > { %v516_v43 = vadd.f32 %v829_v9, %v515_v42  ;;  %1102 = vmatprep.mubr.f32.mxu1 %v552_v38 }
 0x1ec   : > { %1103 = vmatmul.mubr.f32.vlgmr.msra.gmra.mrb[16].mxu1 %v553_v40  ;;  %v555_v46 = vmax.f32 %v521_v41, 0.0 }
 0x1ed   : > { %v554_v44 = vmax.f32 %v516_v43, 0.0  ;;  %v1054_v45 = vpop.f32.mrb[12].mxu1 }
 0x1ee   : > { %v531_v47 = vadd.f32 %v1054_v45, %v829_v9  ;;  %v525_v48 = vpop.f32.mrb[13].mxu1 }
 0x1ef   : > { %v526_v49 = vadd.f32 %v829_v9, %v525_v48  ;;  %1105 = vmatprep.mubr.f32.mxu1 %v554_v44 }
 0x1f0   : > { %1106 = vmatmul.mubr.f32.gmra.mrb[18].mxu1 %v555_v46  ;;  %v557_v52 = vmax.f32 %v531_v47, 0.0 }
 0x1f1   : > { %v556_v50 = vmax.f32 %v526_v49, 0.0  ;;  %v1057_v51 = vpop.f32.mrb[14].mxu1 }
 0x1f2   : > { %v541_v53 = vadd.f32 %v1057_v51, %v829_v9  ;;  %v535_v54 = vpop.f32.mrb[15].mxu1 }
 0x1f3   : > { %v536_v55 = vadd.f32 %v829_v9, %v535_v54  ;;  %1108 = vmatprep.mubr.f32.mxu1 %v556_v50 }
 0x1f4   : > { %1109 = vmatmul.mubr.f32.gmra.mrb[20].mxu1 %v557_v52  ;;  %v559_v57 = vmax.f32 %v541_v53, 0.0 }
 0x1f5   : > { %v558_v56 = vmax.f32 %v536_v55, 0.0 }
 0x1f7   : > { %1111 = vmatprep.mubr.f32.mxu1 %v558_v56 }
 0x1f8   : > { %1112 = vmatmul.mubr.f32.gmra.mrb[22].mxu1 %v559_v57 }
 0x2af   : > { %v1092_v59 = vpop.f32.mrb[16].mxu0 }
 0x2b0   : > { %v657_v60 = vadd.f32 %v1092_v59, %v847_v58  ;;  %v651_v61 = vpop.f32.mrb[17].mxu0 }
 0x2b1   : > { %v652_v62 = vadd.f32 %v847_v58, %v651_v61 }
 0x2b2   : > { %731 = vst [vmem:[%s1496_s27 + $0x8] sm:$0xff] %v657_v60 }
 0x2b3   : > { %730 = vst [vmem:[%s1496_s27] sm:$0xff] %v652_v62  ;;  %v1095_v63 = vpop.f32.mrb[18].mxu0 }
 0x2b4   : > { %v667_v0 = vadd.f32 %v1095_v63, %v847_v58  ;;  %v661_v1 = vpop.f32.mrb[19].mxu0 }
 0x2b5   : > { %v662_v2 = vadd.f32 %v847_v58, %v661_v1 }
 0x2b6   : > { %733 = vst [vmem:[%s1496_s27 + $0x18] sm:$0xff] %v667_v0 }
 0x2b7   : > { %732 = vst [vmem:[%s1496_s27 + $0x10] sm:$0xff] %v662_v2  ;;  %v1098_v3 = vpop.f32.mrb[20].mxu0 }
 0x2b8   : > { %v677_v4 = vadd.f32 %v1098_v3, %v847_v58  ;;  %v671_v5 = vpop.f32.mrb[21].mxu0 }
 0x2b9   : > { %v672_v6 = vadd.f32 %v847_v58, %v671_v5 }
 0x2ba   : > { %735 = vst [vmem:[%s1496_s27 + $0x28] sm:$0xff] %v677_v4 }
 0x2bb   : > { %734 = vst [vmem:[%s1496_s27 + $0x20] sm:$0xff] %v672_v6  ;;  %v1101_v7 = vpop.f32.mrb[22].mxu0 }
 0x2bc   : > { %v687_v8 = vadd.f32 %v1101_v7, %v847_v58  ;;  %v681_v9 = vpop.f32.mrb[23].mxu0 }
 0x2bd   : > { %v682_v10 = vadd.f32 %v847_v58, %v681_v9 }
 0x2be   : > { %737 = vst [vmem:[%s1496_s27 + $0x38] sm:$0xff] %v687_v8 }
 0x2bf   : > { %736 = vst [vmem:[%s1496_s27 + $0x30] sm:$0xff] %v682_v10  ;;  %v1104_v11 = vpop.f32.mrb[16].mxu1 }
 0x2c0   : > { %v697_v12 = vadd.f32 %v1104_v11, %v847_v58  ;;  %v691_v13 = vpop.f32.mrb[17].mxu1 }
 0x2c1   : > { %v692_v14 = vadd.f32 %v847_v58, %v691_v13 }
 0x2c2   : > { %739 = vst [vmem:[%s1496_s27 + $0x48] sm:$0xff] %v697_v12 }
 0x2c3   : > { %738 = vst [vmem:[%s1496_s27 + $0x40] sm:$0xff] %v692_v14  ;;  %v1107_v15 = vpop.f32.mrb[18].mxu1 }
 0x2c4   : > { %v707_v16 = vadd.f32 %v1107_v15, %v847_v58  ;;  %v701_v17 = vpop.f32.mrb[19].mxu1 }
 0x2c5   : > { %v702_v18 = vadd.f32 %v847_v58, %v701_v17 }
 0x2c6   : > { %741 = vst [vmem:[%s1496_s27 + $0x58] sm:$0xff] %v707_v16 }
 0x2c7   : > { %740 = vst [vmem:[%s1496_s27 + $0x50] sm:$0xff] %v702_v18  ;;  %v1110_v19 = vpop.f32.mrb[20].mxu1 }
 0x2c8   : > { %v717_v20 = vadd.f32 %v1110_v19, %v847_v58  ;;  %v711_v21 = vpop.f32.mrb[21].mxu1 }
 0x2c9   : > { %v712_v22 = vadd.f32 %v847_v58, %v711_v21 }
 0x2ca   : > { %743 = vst [vmem:[%s1496_s27 + $0x68] sm:$0xff] %v717_v20 }
 0x2cb   : > { %742 = vst [vmem:[%s1496_s27 + $0x60] sm:$0xff] %v712_v22  ;;  %v1113_v23 = vpop.f32.mrb[22].mxu1 }
 0x2cc   : > { %v727_v24 = vadd.f32 %v1113_v23, %v847_v58  ;;  %v721_v25 = vpop.f32.mrb[23].mxu1 }
 0x2cd   : > { %v722_v26 = vadd.f32 %v847_v58, %v721_v25 }
 0x2ce   : > { %745 = vst [vmem:[%s1496_s27 + $0x78] sm:$0xff] %v727_v24 }
 0x2cf   : > { %744 = vst [vmem:[%s1496_s27 + $0x70] sm:$0xff] %v722_v26 }
 0x2d0 PF: > { %s13_s12 = sadd.s32 1, %s1240_s12  }
 0x2d1   : > { %p10_p4 = scmp.ge.s32.totalorder %s13_s12, 4  }
 0x2d3   :  { %12 = sbr.rel (!%p10_p4) target bundleno = 1 (0x1), region = 66 }

</bundles_post_ra>
